<compile_context>
chip_gen: v5e
topology: v5e:2x2
jax: 0.10.0
libtpu: 0.0.40
codegen_flags: <defaults>
</compile_context>

<pallas_src>
import functools

import jax
import jax.numpy as jnp
from jax.experimental import pallas as pl
from jax.experimental.pallas import tpu as pltpu


def _time2vec_kernel(x_ref, w_ref, b_ref, m_ref, o_ref):
    # x_ref: (tpr, Kp)  w_ref: (Kp, Ep)  b_ref: (1, Ep)  m_ref: (1, Ep)  o_ref: (tpr, Ep)
    y = jnp.dot(x_ref[...], w_ref[...], preferred_element_type=jnp.float32)
    y = y + b_ref[...].astype(jnp.float32)          # sublane-broadcast bias add
    # Precomputed column mask: 1.0 on sin columns, 0.0 on the linear-head
    # column.  sin() runs on the EUP for all columns; the select keeps the
    # linear head.  (Same numerics as the PyTorch module.)
    m = jnp.broadcast_to(m_ref[...], y.shape)
    o_ref[...] = jnp.where(m != 0.0, jnp.sin(y), y).astype(o_ref.dtype)


def _round_up(a, b):
    return ((a + b - 1) // b) * b


def _packing(input_size, embed_size):
    """Lane-dense packing factors: pack P rows of x into one 128-lane row."""
    K, E = input_size, embed_size
    if K <= 128:
        kpad = 1
        while kpad < K:              # next power of two (always divides 128)
            kpad *= 2
        P = 128 // kpad
    else:
        # TODO(synk): no clean lane packing when K > 128; fall back to P = 1.
        kpad = K
        P = 1
    return P, kpad, P * kpad, P * E  # (P, Kpad, Kp, Ep)


def pack_time2vec_params(w_comb, b_comb, embed_size):
    """One-time repack: block-diagonal weight (Kp, Ep), tiled bias (1, Ep) and
    the sin-column mask (1, Ep).  Done outside the per-call jit."""
    K = w_comb.shape[0]
    E = embed_size
    P, kpad, Kp, Ep = _packing(K, E)
    if kpad != K:
        w_comb = jnp.pad(w_comb, ((0, kpad - K), (0, 0)))  # zero MXU cols: free
    if P > 1:
        eye_p = jnp.eye(P, dtype=w_comb.dtype)
        # W_bd[p*Kpad + k, q*E + e] = W[k, e] if p == q else 0
        w_bd = jnp.einsum("pq,ke->pkqe", eye_p, w_comb).reshape(Kp, Ep)
        b_bd = jnp.tile(b_comb, P).reshape(1, Ep)
    else:
        w_bd = w_comb
        b_bd = b_comb.reshape(1, Ep)
    sin_mask = (jnp.arange(Ep) % E != 0).astype(jnp.float32).reshape(1, Ep)
    return w_bd, b_bd, sin_mask


@functools.partial(jax.jit, static_argnames=("embed_size", "tile_rows", "out_dtype"))
def time2vec_forward(x, w_bd, b_bd, sin_mask, *, embed_size, tile_rows=16384,
                     out_dtype=None):
    """x: (B, F, K) -> (B, F, embed_size).

    w_bd / b_bd / sin_mask come from pack_time2vec_params.
    out_dtype: optionally emit e.g. bf16 (accumulation stays f32 in-kernel).
    """
    B, F, K = x.shape
    E = embed_size
    M = B * F
    P, kpad, Kp, Ep = _packing(K, E)
    assert w_bd.shape == (Kp, Ep), (w_bd.shape, (Kp, Ep))
    out_dt = jnp.dtype(out_dtype) if out_dtype is not None else x.dtype

    # ---- flatten + only-if-needed small pads ------------------------------
    x2d = x.reshape(M, K)
    if kpad != K:
        # Zero-pad K up to a divisor of 128 so the packed input stays lane-dense.
        x2d = jnp.pad(x2d, ((0, 0), (0, kpad - K)))
    r = M % P
    m_pad = M if r == 0 else M + (P - r)
    if m_pad != M:
        # < P rows of semantic padding, required for the packed reshape only.
        # TODO(synk): split this tiny tail outside the kernel to make the
        # ragged-M path fully copy-free as well.
        x2d = jnp.pad(x2d, ((0, m_pad - M), (0, 0)))
    packed_rows = m_pad // P
    xp = x2d.reshape(packed_rows, Kp)               # row-major contiguous, free

    # ---- tiling over packed rows (no padding to a tile multiple) ----------
    tpr = max(8, (max(tile_rows // P, 8) // 8) * 8)       # packed rows / tile
    if packed_rows > 16:
        # Ensure grid_m >= 2 so both v7x TensorCores get work on the
        # "parallel" axis; a harmless extra ~0.35us step on v5e/v6e.
        tpr = min(tpr, _round_up(pl.cdiv(packed_rows, 2), 8))
    if packed_rows <= tpr:
        tpr = packed_rows                                 # one full-extent block
    grid_m = pl.cdiv(packed_rows, tpr)                    # last block may be partial

    # ---- VMEM budget: double-buffered I/O tiles + f32 intermediates -------
    in_itm = jnp.dtype(x.dtype).itemsize
    out_itm = jnp.dtype(out_dt).itemsize
    in_tile = tpr * Kp * in_itm
    out_tile = tpr * Ep * out_itm
    f32_tile = tpr * Ep * 4
    budget = 2 * (in_tile + out_tile) + 3 * f32_tile + Kp * Ep * 4 + (1 << 20)
    vmem_limit = int(max(32 << 20, int(1.5 * budget)))

    outp = pl.pallas_call(
        _time2vec_kernel,
        out_shape=jax.ShapeDtypeStruct((packed_rows, Ep), out_dt),
        grid_spec=pltpu.PrefetchScalarGridSpec(
            num_scalar_prefetch=0,
            grid=(grid_m,),
            in_specs=[
                pl.BlockSpec((tpr, Kp), lambda i: (i, 0)),   # x tile
                pl.BlockSpec((Kp, Ep), lambda i: (0, 0)),    # weight (invariant)
                pl.BlockSpec((1, Ep), lambda i: (0, 0)),     # bias (invariant)
                pl.BlockSpec((1, Ep), lambda i: (0, 0)),     # sin mask (invariant)
            ],
            out_specs=pl.BlockSpec((tpr, Ep), lambda i: (i, 0)),
        ),
        compiler_params=pltpu.CompilerParams(
            dimension_semantics=("parallel",),               # megacore on v7x
            vmem_limit_bytes=vmem_limit,
        ),
        cost_estimate=pl.CostEstimate(
            flops=2 * packed_rows * Kp * Ep,
            transcendentals=packed_rows * Ep,                # sin on all columns
            bytes_accessed=(in_itm * packed_rows * Kp
                            + 4 * (Kp * Ep + 2 * Ep)
                            + out_itm * packed_rows * Ep),
        ),
    )(xp, w_bd, b_bd, sin_mask)

    out2d = outp.reshape(m_pad, E)                   # row-major, free
    if m_pad != M:
        out2d = out2d[:M]                            # only the < P-row pad case
    return out2d.reshape(B, F, E)


def make_params(key, input_size, embed_size, dtype=jnp.float32):
    """Deterministic synthetic parameters matching nn.Linear shapes.

    lin:    weight (1, input_size),            bias (1,)
    nonlin: weight (embed_size-1, input_size), bias (embed_size-1,)
    Combined into W (input_size, embed_size), b (embed_size,) with the
    `lin` head occupying column 0.
    """
    k1, k2, k3, k4 = jax.random.split(key, 4)
    bound = 1.0 / jnp.sqrt(input_size)
    lin_w = jax.random.uniform(k1, (1, input_size), dtype, -bound, bound)
    lin_b = jax.random.uniform(k2, (1,), dtype, -bound, bound)
    nonlin_w = jax.random.uniform(k3, (embed_size - 1, input_size), dtype, -bound, bound)
    nonlin_b = jax.random.uniform(k4, (embed_size - 1,), dtype, -bound, bound)

    w_comb = jnp.concatenate([lin_w, nonlin_w], axis=0).T  # (input_size, embed_size)
    b_comb = jnp.concatenate([lin_b, nonlin_b], axis=0)    # (embed_size,)
    return w_comb, b_comb


def reference(x, w_comb, b_comb):
    y = jnp.einsum("bfk,ke->bfe", x, w_comb) + b_comb
    v1 = y[..., :1]
    v2 = jnp.sin(y[..., 1:])
    return jnp.concatenate([v1, v2], axis=2)


if __name__ == "__main__":
    batch, feature, input_size, embed_size = 2, 8, 16, 32

    key = jax.random.PRNGKey(0)
    kx, kp = jax.random.split(key)
    x = jax.random.normal(kx, (batch, feature, input_size), jnp.float32)
    w_comb, b_comb = make_params(kp, input_size, embed_size)
    w_bd, b_bd, sin_mask = pack_time2vec_params(w_comb, b_comb, embed_size)

    # Copy-free path: M % P == 0, single full-extent block.
    out = time2vec_forward(x, w_bd, b_bd, sin_mask, embed_size=embed_size)
    out = jax.block_until_ready(out)
    ref = reference(x, w_comb, b_comb)
    assert out.shape == (batch, feature, embed_size), out.shape
    assert jnp.allclose(out, ref, atol=1e-5, rtol=1e-5), "mismatch vs reference"

    # Multi-tile + ragged tail (M % P != 0) + partial last grid block.
    kx2 = jax.random.fold_in(kx, 1)
    x2 = jax.random.normal(kx2, (3, 50, input_size), jnp.float32)
    out2 = time2vec_forward(x2, w_bd, b_bd, sin_mask, embed_size=embed_size, tile_rows=64)
    out2 = jax.block_until_ready(out2)
    ref2 = reference(x2, w_comb, b_comb)
    assert out2.shape == (3, 50, embed_size), out2.shape
    assert jnp.allclose(out2, ref2, atol=1e-5, rtol=1e-5), "mismatch vs reference (tiled)"

    # K that does not divide 128 -> zero-padded to the next divisor (24 -> 32).
    input_size3 = 24
    kp3 = jax.random.fold_in(kp, 2)
    w3, b3 = make_params(kp3, input_size3, embed_size)
    w3_bd, b3_bd, mask3 = pack_time2vec_params(w3, b3, embed_size)
    kx3 = jax.random.fold_in(kx, 2)
    x3 = jax.random.normal(kx3, (2, 5, input_size3), jnp.float32)
    out3 = time2vec_forward(x3, w3_bd, b3_bd, mask3, embed_size=embed_size)
    out3 = jax.block_until_ready(out3)
    ref3 = reference(x3, w3, b3)
    assert out3.shape == (2, 5, embed_size), out3.shape
    assert jnp.allclose(out3, ref3, atol=1e-5, rtol=1e-5), "mismatch vs reference (K pad)"

    print("KERNEL_OK")
</pallas_src>

<mosaic_0001>
module attributes {stable_mosaic.version = 11 : i64} {
  func.func @_time2vec_kernel(%arg0: i32, %arg1: memref<2x128xf32, #tpu.memory_space<vmem>>, %arg2: memref<128x256xf32, #tpu.memory_space<vmem>>, %arg3: memref<1x256xf32, #tpu.memory_space<vmem>>, %arg4: memref<1x256xf32, #tpu.memory_space<vmem>>, %arg5: memref<2x256xf32, #tpu.memory_space<vmem>>) attributes {dimension_semantics = [#tpu.dimension_semantics<parallel>], iteration_bounds = array<i64: 1>, scalar_prefetch = 0 : i64, scratch_operands = 0 : i64, tpu.core_type = #tpu.core_type<tc>, window_params = [{transform_indices = @transform_0, window_bounds = array<i64: 2, 128>}, {pipeline_mode = #tpu.pipeline_mode<synchronous>, transform_indices = @transform_1, window_bounds = array<i64: 128, 256>}, {pipeline_mode = #tpu.pipeline_mode<synchronous>, transform_indices = @transform_2, window_bounds = array<i64: 1, 256>}, {pipeline_mode = #tpu.pipeline_mode<synchronous>, transform_indices = @transform_3, window_bounds = array<i64: 1, 256>}, {transform_indices = @transform_4, window_bounds = array<i64: 2, 256>}]} {
    %c0 = arith.constant 0 : index
    %c0_0 = arith.constant 0 : index
    %0 = vector.load %arg1[%c0, %c0_0] : memref<2x128xf32, #tpu.memory_space<vmem>>, vector<2x128xf32>
    %c0_1 = arith.constant 0 : index
    %c0_2 = arith.constant 0 : index
    %1 = vector.load %arg2[%c0_1, %c0_2] : memref<128x256xf32, #tpu.memory_space<vmem>>, vector<128x256xf32>
    %cst = arith.constant dense<0.000000e+00> : vector<2x256xf32>
    %2 = tpu.matmul %0, %1, %cst {dimension_numbers = #tpu.dot_dimension_numbers<[1], [0], [0], [1], [0, 0, 1, 1], [], []>} : vector<2x128xf32>, vector<128x256xf32>, vector<2x256xf32> -> vector<2x256xf32>
    %c0_3 = arith.constant 0 : index
    %c0_4 = arith.constant 0 : index
    %3 = vector.load %arg3[%c0_3, %c0_4] : memref<1x256xf32, #tpu.memory_space<vmem>>, vector<1x256xf32>
    %4 = vector.broadcast %3 : vector<1x256xf32> to vector<2x256xf32>
    %5 = arith.addf %2, %4 : vector<2x256xf32>
    %c0_5 = arith.constant 0 : index
    %c0_6 = arith.constant 0 : index
    %6 = vector.load %arg4[%c0_5, %c0_6] : memref<1x256xf32, #tpu.memory_space<vmem>>, vector<1x256xf32>
    %7 = vector.shape_cast %6 : vector<1x256xf32> to vector<1x256xf32>
    %8 = vector.broadcast %7 : vector<1x256xf32> to vector<2x256xf32>
    %cst_7 = arith.constant 0.000000e+00 : f32
    %9 = vector.broadcast %cst_7 : f32 to vector<2x256xf32>
    %10 = arith.cmpf one, %8, %9 : vector<2x256xf32>
    %11 = math.sin %5 : vector<2x256xf32>
    %12 = arith.select %10, %11, %5 : vector<2x256xi1>, vector<2x256xf32>
    %c0_8 = arith.constant 0 : index
    %c0_9 = arith.constant 0 : index
    %13 = vector.load %arg5[%c0_8, %c0_9] : memref<2x256xf32, #tpu.memory_space<vmem>>, vector<2x256xf32>
    tpu.vector_store %arg5[%c0_8, %c0_9], %12 {strides = array<i32>} : memref<2x256xf32, #tpu.memory_space<vmem>>, vector<2x256xf32>,
    return
  }
  func.func @transform_0(%arg0: i32) -> (i32, i32) {
    %c0_i32 = arith.constant 0 : i32
    %c0_i32_0 = arith.constant 0 : i32
    return %arg0, %c0_i32 : i32, i32
  }
  func.func @transform_1(%arg0: i32) -> (i32, i32) {
    %c0_i32 = arith.constant 0 : i32
    %c0_i32_0 = arith.constant 0 : i32
    %c0_i32_1 = arith.constant 0 : i32
    return %c0_i32, %c0_i32_0 : i32, i32
  }
  func.func @transform_2(%arg0: i32) -> (i32, i32) {
    %c0_i32 = arith.constant 0 : i32
    %c0_i32_0 = arith.constant 0 : i32
    %c0_i32_1 = arith.constant 0 : i32
    return %c0_i32, %c0_i32_0 : i32, i32
  }
  func.func @transform_3(%arg0: i32) -> (i32, i32) {
    %c0_i32 = arith.constant 0 : i32
    %c0_i32_0 = arith.constant 0 : i32
    %c0_i32_1 = arith.constant 0 : i32
    return %c0_i32, %c0_i32_0 : i32, i32
  }
  func.func @transform_4(%arg0: i32) -> (i32, i32) {
    %c0_i32 = arith.constant 0 : i32
    %c0_i32_0 = arith.constant 0 : i32
    return %arg0, %c0_i32 : i32, i32
  }
}

</mosaic_0001>

<bundles_post_ra>
// kernel: time2vec_forward.1
= control target key start
LH: loop header
LB: loop body
LE: loop exit
PB: predicated region body
PF: predicated region fallthrough
CT: control target
= control target key end

     0   :  { %9 = vsyncpa [#allocation3], 0  ;;  %s486_s18 = smov [#allocation2]   ;;  %s487_s20 = smov 256   ;;  %s709_s0 = inlined_call_operand.vmem [shape: f32[2,128], index: 0, kind: input, shape index: {}]   ;;  %s710_s1 = inlined_call_operand.hbm [shape: f32[128,256], index: 1, kind: input, shape index: {}]   ;;  %s711_s2 = inlined_call_operand.vmem [shape: f32[1,256], index: 2, kind: input, shape index: {}]   ;;  %s712_s3 = inlined_call_operand.vmem [shape: f32[1,256], index: 3, kind: input, shape index: {}]   ;;  %s713_s4 = inlined_call_operand.vmem [shape: f32[2,256], index: 4, kind: output, shape index: {}]  }
   0x1   :  { %s16_s17 = sshll.u32 %s710_s1, 4  ;;  %s18_s19 = sshll.u32 %s486_s18, 4  ;;  %s17_s17 = int_to_ptr.hbm [resolvable:$true] %s16_s17  ;;  %s19_s19 = int_to_ptr.vmem [resolvable:$true] %s18_s19 }
   0x2   :  { %s488_s21 = smov 16  }
   0x3   :  { %24 = dma.hbm_to_vmem [thread:$0]  %s17_s17, 4096, %s19_s19, [#allocation3], %s487_s20, %s487_s20, %s488_s21  }
   0x4   :  { %484 = dma.done.wait [#allocation3], 4096  }
   0x5   :  { %485 = vsyncadd [#allocation3], 4294963200  ;;  %v64_v0 = vld [vmem:[#allocation2 + $0xf0] sm:$0xff]  ;;  %v65_v1 = vld [vmem:[#allocation2 + $0xf8] sm:$0xff]  ;;  %v489_v60 = vmov 683565275  }
   0x6   :  { %v62_v2 = vld [vmem:[#allocation2 + $0xe0] sm:$0xff]  ;;  %72 = vmatpush.msra.mxu0 %v64_v0  ;;  %92 = vmatpush.msra.mxu1 %v65_v1  ;;  %v63_v3 = vld [vmem:[#allocation2 + $0xe8] sm:$0xff]  ;;  %v60_v4 = vld [vmem:[#allocation2 + $0xd0] sm:$0xff]  ;;  %v490_v62 = vmov 2475754826  }
   0x7   :  { %v61_v5 = vld [vmem:[#allocation2 + $0xd8] sm:$0xff]  ;;  %v58_v6 = vld [vmem:[#allocation2 + $0xc0] sm:$0xff]  ;;  %v59_v7 = vld [vmem:[#allocation2 + $0xc8] sm:$0xff]  ;;  %v491_v0 = vmov 2131351028  }
   0x8   :  { %73 = vmatpush.msra.mxu0 %v62_v2  ;;  %93 = vmatpush.msra.mxu1 %v63_v3  ;;  %v56_v8 = vld [vmem:[#allocation2 + $0xb0] sm:$0xff]  ;;  %v57_v9 = vld [vmem:[#allocation2 + $0xb8] sm:$0xff]  ;;  %v54_v10 = vld [vmem:[#allocation2 + $0xa0] sm:$0xff]  ;;  %v492_v3 = vmov 2102212464  }
   0x9   :  { %v55_v11 = vld [vmem:[#allocation2 + $0xa8] sm:$0xff]  ;;  %v52_v12 = vld [vmem:[#allocation2 + $0x90] sm:$0xff]  ;;  %v53_v13 = vld [vmem:[#allocation2 + $0x98] sm:$0xff] }
   0xa   :  { %74 = vmatpush.msra.mxu0 %v60_v4  ;;  %94 = vmatpush.msra.mxu1 %v61_v5  ;;  %v50_v14 = vld [vmem:[#allocation2 + $0x80] sm:$0xff]  ;;  %v51_v15 = vld [vmem:[#allocation2 + $0x88] sm:$0xff]  ;;  %v48_v16 = vld [vmem:[#allocation2 + $0x70] sm:$0xff]  ;;  %v493_v5 = vmov 920167782  }
   0xb   :  { %v49_v17 = vld [vmem:[#allocation2 + $0x78] sm:$0xff]  ;;  %v46_v18 = vld [vmem:[#allocation2 + $0x60] sm:$0xff]  ;;  %v47_v19 = vld [vmem:[#allocation2 + $0x68] sm:$0xff] }
   0xc   :  { %75 = vmatpush.msra.mxu0 %v58_v6  ;;  %95 = vmatpush.msra.mxu1 %v59_v7  ;;  %v44_v20 = vld [vmem:[#allocation2 + $0x50] sm:$0xff]  ;;  %v45_v21 = vld [vmem:[#allocation2 + $0x58] sm:$0xff]  ;;  %v42_v22 = vld [vmem:[#allocation2 + $0x40] sm:$0xff] }
   0xd   :  { %v43_v23 = vld [vmem:[#allocation2 + $0x48] sm:$0xff]  ;;  %v40_v24 = vld [vmem:[#allocation2 + $0x30] sm:$0xff]  ;;  %v41_v25 = vld [vmem:[#allocation2 + $0x38] sm:$0xff] }
   0xe   :  { %76 = vmatpush.msra.mxu0 %v56_v8  ;;  %96 = vmatpush.msra.mxu1 %v57_v9  ;;  %v38_v26 = vld [vmem:[#allocation2 + $0x20] sm:$0xff]  ;;  %v39_v27 = vld [vmem:[#allocation2 + $0x28] sm:$0xff]  ;;  %v36_v28 = vld [vmem:[#allocation2 + $0x10] sm:$0xff] }
   0xf   :  { %v37_v29 = vld [vmem:[#allocation2 + $0x18] sm:$0xff]  ;;  %v34_v30 = vld [vmem:[#allocation2] sm:$0xff]  ;;  %v35_v31 = vld [vmem:[#allocation2 + $0x8] sm:$0xff] }
  0x10   :  { %77 = vmatpush.msra.mxu0 %v54_v10  ;;  %97 = vmatpush.msra.mxu1 %v55_v11  ;;  %v33_v32 = vld [vmem:[%s709_s0] sm:$0x3] }
  0x11   :  { %v66_v33 = vld [vmem:[%s711_s2] sm:$0x3] }
  0x12   :  { %78 = vmatpush.msra.mxu0 %v52_v12  ;;  %98 = vmatpush.msra.mxu1 %v53_v13  ;;  %v68_v34 = vperm.slane %v66_v33, 0  ;;  %v69_v35 = vperm.slane %v66_v33, 1  ;;  %v494_v12 = vmov 1326507024  }
  0x14   :  { %79 = vmatpush.msra.mxu0 %v50_v14  ;;  %99 = vmatpush.msra.mxu1 %v51_v15 }
  0x16   :  { %80 = vmatpush.msra.mxu0 %v48_v16  ;;  %100 = vmatpush.msra.mxu1 %v49_v17 }
  0x18   :  { %81 = vmatpush.msra.mxu0 %v46_v18  ;;  %101 = vmatpush.msra.mxu1 %v47_v19 }
  0x1a   :  { %82 = vmatpush.msra.mxu0 %v44_v20  ;;  %102 = vmatpush.msra.mxu1 %v45_v21 }
  0x1c   :  { %83 = vmatpush.msra.mxu0 %v42_v22  ;;  %103 = vmatpush.msra.mxu1 %v43_v23 }
  0x1e   :  { %84 = vmatpush.msra.mxu0 %v40_v24  ;;  %104 = vmatpush.msra.mxu1 %v41_v25 }
  0x20   :  { %85 = vmatpush.msra.mxu0 %v38_v26  ;;  %105 = vmatpush.msra.mxu1 %v39_v27 }
  0x22   :  { %86 = vmatpush.msra.mxu0 %v36_v28  ;;  %106 = vmatpush.msra.mxu1 %v37_v29 }
  0x24   :  { %87 = vmatpush.msra.mxu0 %v34_v30  ;;  %107 = vmatpush.msra.mxu1 %v35_v31 }
  0x25   :  { %88 = vmatmul.f32.vlgmr.msra.gmra.mxu0 %v33_v32  ;;  %108 = vmatmul.f32.vlgmr.msra.gmra.mxu1 %v33_v32 }
  0xa2   :  { %v89_v36 = vpop.f32.mrf.mxu0  ;;  %v109_v37 = vpop.f32.mrf.mxu1 }
  0xa3   :  { %v530_v38 = vadd.f32 %v89_v36, %v68_v34  ;;  %v532_v39 = vadd.f32 %v109_v37, %v69_v35 }
  0xa5   :  { %v120_v40 = vand.u32 2147483647, %v530_v38  ;;  %v123_v41 = vand.u32 2139095040, %v530_v38  ;;  %v278_v42 = vand.u32 2139095040, %v532_v39  ;;  %v275_v44 = vand.u32 2147483647, %v532_v39 }
  0xa7   :  { %v124_v43 = vshrl.u32 %v123_v41, 23  ;;  %v127_v45 = vand.u32 8388607, %v120_v40  ;;  %v279_v46 = vshrl.u32 %v278_v42, 23  ;;  %v282_v50 = vand.u32 8388607, %v275_v44 }
  0xa9   :  { %v444_v47 = vadd.s32 4294967169, %v124_v43  ;;  %v447_v48 = vadd.s32 4294967169, %v279_v46  ;;  %v128_v51 = vor.u32 8388608, %v127_v45  ;;  %v283_v55 = vor.u32 8388608, %v282_v50 }
  0xab   :  { %v130_v49 = vadd.s32 1, %v444_v47  ;;  %v285_v52 = vadd.s32 1, %v447_v48  ;;  %v542_v57 = vshll.u32 %v128_v51, 8  ;;  %v552_v10 = vshll.u32 %v283_v55, 8 }
  0xad   :  { %vm131_vm0 = vcmp.gt.s32.totalorder %v130_v49, 0  ;;  %vm286_vm1 = vcmp.gt.s32.totalorder %v285_v52, 0  ;;  %v169_v14 = vand.u32 65535, %v542_v57  ;;  %v170_v15 = vshrl.u32 %v542_v57, 16 }
  0xae   :  { %v132_v53 = vsel %vm131_vm0, %v130_v49, 0  ;;  %v287_v56 = vsel %vm286_vm1, %v285_v52, 0 }
  0xaf   :  { %v134_v54 = vand.u32 31, %v132_v53  ;;  %v544_v58 = vand.u32 31, %v287_v56  ;;  %v547_v2 = vshrl.u32 %v132_v53, 5  ;;  %v587_v46 = vshrl.u32 %v287_v56, 5 }
  0xb1   :  { %v135_v59 = vsub.s32 32, %v134_v54  ;;  %v137_v61 = vshll.u32 %v489_v60, %v134_v54  ;;  %v140_v63 = vshll.u32 %v490_v62, %v134_v54  ;;  %v143_v1 = vshll.u32 %v491_v0, %v134_v54 }
  0xb2   :  { %v146_v4 = vshll.u32 %v492_v3, %v134_v54  ;;  %v149_v6 = vshll.u32 %v493_v5, %v134_v54  ;;  %v559_v19 = vsub.s32 32, %v544_v58  ;;  %vm152_vm2 = vcmp.lt.s32.totalorder %v547_v2, 1 }
  0xb3   :  { %v138_v7 = vshrl.u32 %v490_v62, %v135_v59  ;;  %v141_v8 = vshrl.u32 %v491_v0, %v135_v59  ;;  %v144_v9 = vshrl.u32 %v492_v3, %v135_v59  ;;  %v147_v11 = vshrl.u32 %v493_v5, %v135_v59 }
  0xb4   :  { %v150_v13 = vshrl.u32 %v494_v12, %v135_v59  ;;  %vm153_vm3 = vcmp.lt.s32.totalorder %v547_v2, 2  ;;  %v136_v22 = vshrl.u32 %v489_v60, %v135_v59  ;;  %vm155_vm4 = vcmp.lt.s32.totalorder %v547_v2, 4 }
  0xb5   :  { %v139_v16 = vor.u32 %v138_v7, %v137_v61  ;;  %v142_v17 = vor.u32 %v141_v8, %v140_v63  ;;  %v145_v18 = vor.u32 %v144_v9, %v143_v1  ;;  %v148_v20 = vor.u32 %v147_v11, %v146_v4 }
  0xb6   :  { %v151_v21 = vor.u32 %v150_v13, %v149_v6  ;;  %vm154_vm5 = vcmp.lt.s32.totalorder %v547_v2, 3  ;;  %v292_v27 = vshll.u32 %v489_v60, %v544_v58  ;;  %v293_v31 = vshrl.u32 %v490_v62, %v559_v19 }
  0xb7   :  { %v160_v23 = vsel %vm152_vm2, %v139_v16, %v142_v17  ;;  %v164_v24 = vsel %vm152_vm2, %v142_v17, %v145_v18  ;;  %v161_v25 = vsel %vm155_vm4, %v148_v20, 920167782  ;;  %v157_v28 = vsel %vm155_vm4, %v145_v18, 2102212464 }
  0xb8   :  { %v165_v26 = vsel %vm155_vm4, %v151_v21, 1326507024  ;;  %v162_v29 = vsel %vm154_vm5, %v145_v18, %v161_v25  ;;  %v295_v34 = vshll.u32 %v490_v62, %v544_v58  ;;  %v296_v35 = vshrl.u32 %v491_v0, %v559_v19 }
  0xb9   :  { %v166_v30 = vsel %vm154_vm5, %v148_v20, %v165_v26  ;;  %v163_v32 = vsel %vm153_vm3, %v160_v23, %v162_v29  ;;  %v156_v43 = vsel %vm152_vm2, %v136_v22, %v139_v16  ;;  %v158_v45 = vsel %vm154_vm5, %v142_v17, %v157_v28 }
  0xba   :  { %v167_v33 = vsel %vm153_vm3, %v164_v24, %v166_v30  ;;  %v193_v41 = vand.u32 65535, %v163_v32  ;;  %v194_v42 = vshrl.u32 %v163_v32, 16  ;;  %v589_v47 = vor.u32 %v293_v31, %v292_v27 }
  0xbb   :  { %v171_v36 = vand.u32 65535, %v167_v33  ;;  %v172_v37 = vshrl.u32 %v167_v33, 16  ;;  %v591_v50 = vor.u32 %v296_v35, %v295_v34  ;;  %v299_v51 = vshrl.u32 %v492_v3, %v559_v19 }
  0xbc   :  { %v196_v53 = vmul.u32 %v194_v42, %v169_v14  ;;  %v197_v54 = vmul.u32 %v193_v41, %v170_v15  ;;  %v298_v55 = vshll.u32 %v491_v0, %v544_v58  ;;  %v195_v62 = vmul.u32 %v193_v41, %v169_v14 }
  0xbd   :  { %v174_v48 = vmul.u32 %v172_v37, %v169_v14  ;;  %v175_v49 = vmul.u32 %v171_v36, %v170_v15  ;;  %v173_v52 = vmul.u32 %v171_v36, %v169_v14  ;;  %v176_v59 = vmul.u32 %v172_v37, %v170_v15 }
  0xbe   :  { %v198_v63 = vmul.u32 %v194_v42, %v170_v15  ;;  %v199_v6 = vshll.u32 %v196_v53, 16  ;;  %v201_v8 = vshll.u32 %v197_v54, 16  ;;  %v596_v9 = vor.u32 %v299_v51, %v298_v55 }
  0xbf   :  { %v177_v61 = vshll.u32 %v174_v48, 16  ;;  %v178_v56 = vshrl.u32 %v174_v48, 16  ;;  %v179_v1 = vshll.u32 %v175_v49, 16  ;;  %v180_v4 = vshrl.u32 %v175_v49, 16 }
  0xc0   :  { %v495_v11 = vmov 0   ;;  %vm203_vm7 = vc.u32 %v195_v62, %v199_v6  ;;  %v205_v16 = vadd.s32 %v199_v6, %v195_v62  ;;  %v302_v0 = vshrl.u32 %v493_v5, %v559_v19 }
  0xc1   :  { %vm181_vm6 = vc.u32 %v173_v52, %v177_v61  ;;  %v183_v7 = vadd.s32 %v177_v61, %v173_v52  ;;  %v204_v14 = vsel %vm203_vm7, 1, %v495_v11  ;;  %v301_v15 = vshll.u32 %v492_v3, %v544_v58 }
  0xc2   :  { %v182_v13 = vsel %vm181_vm6, 1, %v495_v11  ;;  %v206_v20 = vadd.s32 %v204_v14, %v198_v63  ;;  %vm207_vm9 = vc.u32 %v205_v16, %v201_v8  ;;  %v304_v21 = vshll.u32 %v493_v5, %v544_v58 }
  0xc3   :  { %v184_v17 = vadd.s32 %v182_v13, %v176_v59  ;;  %vm185_vm8 = vc.u32 %v183_v7, %v179_v1  ;;  %v208_v23 = vsel %vm207_vm9, 1, %v495_v11  ;;  %v303_v24 = vor.u32 %v302_v0, %v301_v15 }
  0xc4   :  { %v186_v18 = vsel %vm185_vm8, 1, %v495_v11  ;;  %v305_v25 = vshrl.u32 %v494_v12, %v559_v19  ;;  %v200_v26 = vshrl.u32 %v196_v53, 16  ;;  %v202_v27 = vshrl.u32 %v197_v54, 16 }
  0xc5   :  { %v188_v22 = vadd.s32 %v186_v18, %v184_v17  ;;  %v610_v28 = vadd.s32 %v205_v16, %v201_v8  ;;  %v210_v29 = vadd.s32 %v208_v23, %v206_v20  ;;  %vm307_vm10 = vcmp.lt.s32.totalorder %v587_v46, 1 }
  0xc6   :  { %v306_v30 = vor.u32 %v305_v25, %v304_v21  ;;  %vm310_vm11 = vcmp.lt.s32.totalorder %v587_v46, 4  ;;  %vm309_vm12 = vcmp.lt.s32.totalorder %v587_v46, 3  ;;  %v315_v58 = vsel %vm307_vm10, %v589_v47, %v591_v50 }
  0xc7   :  { %v189_v3 = vadd.s32 %v188_v22, %v178_v56  ;;  %v211_v31 = vadd.s32 %v210_v29, %v200_v26  ;;  %v316_v5 = vsel %vm310_vm11, %v303_v24, 920167782  ;;  %vm308_vm13 = vcmp.lt.s32.totalorder %v587_v46, 2 }
  0xc8   :  { %v317_v32 = vsel %vm309_vm12, %v596_v9, %v316_v5  ;;  %v319_v33 = vsel %vm307_vm10, %v591_v50, %v596_v9  ;;  %v159_v34 = vsel %vm153_vm3, %v156_v43, %v158_v45  ;;  %v320_v37 = vsel %vm310_vm11, %v306_v30, 1326507024 }
  0xc9   :  { %v621_v12 = vadd.s32 %v189_v3, %v180_v4  ;;  %v212_v35 = vadd.s32 %v211_v31, %v202_v27  ;;  %v318_v36 = vsel %vm308_vm13, %v315_v58, %v317_v32  ;;  %v321_v41 = vsel %vm309_vm12, %v303_v24, %v320_v37 }
  0xca   :  { %v324_v42 = vand.u32 65535, %v552_v10  ;;  %v348_v48 = vand.u32 65535, %v318_v36  ;;  %v322_v2 = vsel %vm308_vm13, %v319_v33, %v321_v41  ;;  %v325_v43 = vshrl.u32 %v552_v10, 16 }
  0xcb   :  { %vm215_vm14 = vc.u32 %v621_v12, %v610_v28  ;;  %v216_v49 = vadd.s32 1, %v212_v35  ;;  %v349_v45 = vshrl.u32 %v318_v36, 16  ;;  %v213_v51 = vmul.u32 %v542_v57, %v159_v34 }
  0xcc   :  { %v326_v52 = vand.u32 65535, %v322_v2  ;;  %v327_v53 = vshrl.u32 %v322_v2, 16  ;;  %v352_v59 = vmul.u32 %v348_v48, %v325_v43  ;;  %v350_v56 = vmul.u32 %v348_v48, %v324_v42 }
  0xcd   :  { %v217_v54 = vsel %vm215_vm14, %v216_v49, %v212_v35  ;;  %v351_v55 = vmul.u32 %v349_v45, %v324_v42  ;;  %v353_v1 = vmul.u32 %v349_v45, %v325_v43  ;;  %v312_v22 = vsel %vm310_vm11, %v596_v9, 2102212464 }
  0xce   :  { %v218_v61 = vadd.s32 %v217_v54, %v213_v51  ;;  %v329_v62 = vmul.u32 %v327_v53, %v324_v42  ;;  %v330_v63 = vmul.u32 %v326_v52, %v325_v43  ;;  %v328_v7 = vmul.u32 %v326_v52, %v324_v42 }
  0xcf   :  { %v354_v4 = vshll.u32 %v351_v55, 16  ;;  %v331_v8 = vmul.u32 %v327_v53, %v325_v43  ;;  %v356_v0 = vshll.u32 %v352_v59, 16  ;;  %v291_v24 = vshrl.u32 %v489_v60, %v559_v19 }
  0xd0   :  { %v219_v6 = vadd.s32 536870912, %v218_v61  ;;  %v332_v13 = vshll.u32 %v329_v62, 16  ;;  %v334_v16 = vshll.u32 %v330_v63, 16  ;;  %v333_v29 = vshrl.u32 %v329_v62, 16 }
  0xd1   :  { %vm358_vm15 = vc.u32 %v350_v56, %v354_v4  ;;  %v360_v17 = vadd.s32 %v354_v4, %v350_v56  ;;  %v311_v31 = vsel %vm307_vm10, %v291_v24, %v589_v47  ;;  %v313_v9 = vsel %vm309_vm12, %v591_v50, %v312_v22 }
  0xd2   :  { %v646_v57 = vshrl.u32 %v219_v6, 30  ;;  %vm336_vm0 = vc.u32 %v328_v7, %v332_v13  ;;  %v338_v14 = vadd.s32 %v332_v13, %v328_v7  ;;  %v359_v15 = vsel %vm358_vm15, 1, %v495_v11 }
  0xd3   :  { %v337_v18 = vsel %vm336_vm0, 1, %v495_v11  ;;  %v361_v20 = vadd.s32 %v359_v15, %v353_v1  ;;  %vm362_vm1 = vc.u32 %v360_v17, %v356_v0  ;;  %v355_v58 = vshrl.u32 %v351_v55, 16 }
  0xd4   :  { %v221_v21 = vshll.u32 %v646_v57, 30  ;;  %v339_v23 = vadd.s32 %v337_v18, %v331_v8  ;;  %vm340_vm2 = vc.u32 %v338_v14, %v334_v16  ;;  %v363_v26 = vsel %vm362_vm1, 1, %v495_v11 }
  0xd5   :  { %v341_v25 = vsel %vm340_vm2, 1, %v495_v11  ;;  %v365_v30 = vadd.s32 %v363_v26, %v361_v20  ;;  %v335_v60 = vshrl.u32 %v330_v63, 16  ;;  %v357_v32 = vshrl.u32 %v352_v59, 16 }
  0xd6   :  { %v222_v27 = vsub.s32 %v218_v61, %v221_v21  ;;  %v343_v3 = vadd.s32 %v341_v25, %v339_v23  ;;  %v314_v36 = vsel %vm308_vm13, %v311_v31, %v313_v9  ;;  %v364_v37 = vadd.s32 %v360_v17, %v356_v0 }
  0xd7   :  { %v366_v33 = vadd.s32 %v365_v30, %v355_v58  ;;  %v368_v50 = vmul.u32 %v552_v10, %v314_v36  ;;  %v214_v43 = vadd.s32 %v610_v28, %v621_v12  ;;  %vm122_vm7 = vcmp.lt.s32.totalorder %v530_v38, 0 }
  0xd8   :  { %vm223_vm3 = vcmp.lt.s32.totalorder %v222_v27, 0  ;;  %v224_v5 = vsub.s32 0, %v222_v27  ;;  %v344_v19 = vadd.s32 %v343_v3, %v333_v29  ;;  %vm672_vm8 = vcmp.le.f32.partialorder %v120_v40, 0.7853982 }
  0xd9   :  { %v367_v41 = vadd.s32 %v366_v33, %v357_v32  ;;  %vm277_vm10 = vcmp.lt.s32.totalorder %v532_v39, 0  ;;  %vm685_vm11 = vcmp.le.f32.partialorder %v275_v44, 0.7853982 }
  0xda   :  { %v225_v11 = vsel %vm223_vm3, %v224_v5, %v222_v27  ;;  %v345_v34 = vadd.s32 %v344_v19, %v335_v60  ;;  %v244_v60 = vsub.s32 4, %v646_v57  ;;  %vm263_vm3 = vweird.f32 %v530_v38 }
  0xdb   :  { %v226_v35 = vclz %v225_v11  ;;  %v371_v42 = vadd.s32 1, %v367_v41 }
  0xdc   :  { %vm370_vm4 = vc.u32 %v345_v34, %v364_v37  ;;  %v369_v18 = vadd.s32 %v364_v37, %v345_v34 }
  0xdd   :  { %v445_v47 = vadd.s32 4294967294, %v226_v35  ;;  %v372_v48 = vsel %vm370_vm4, %v371_v42, %v367_v41  ;;  %v245_v35 = vsel %vm122_vm7, %v244_v60, %v646_v57  ;;  %vm418_vm4 = vweird.f32 %v532_v39 }
  0xde   :  { %v373_v2 = vadd.s32 %v372_v48, %v368_v50  ;;  %v247_v42 = vsel %vm672_vm8, 0, %v245_v35 }
  0xdf   :  { %vm446_vm5 = vcmp.lt.s32.totalorder %v445_v47, 0 }
  0xe0   :  { %v229_v49 = vsel %vm446_vm5, 0, %v445_v47  ;;  %v374_v52 = vadd.s32 536870912, %v373_v2 }
  0xe1   :  { %v230_v45 = vsub.s32 32, %v229_v49  ;;  %v234_v51 = vsub.s32 4294967266, %v229_v49  ;;  %v231_v53 = vshll.u32 %v222_v27, %v229_v49 }
  0xe2   :  { %v375_v55 = vshrl.u32 %v374_v52, 30 }
  0xe3   :  { %v232_v46 = vshrl.u32 %v214_v43, %v230_v45  ;;  %v235_v54 = vadd.s32 127, %v234_v51  ;;  %v264_v51 = vadd.s32 3, %v247_v42 }
  0xe4   :  { %v376_v62 = vshll.u32 %v375_v55, 30  ;;  %v399_v36 = vsub.s32 4, %v375_v55 }
  0xe5   :  { %v233_v59 = vor.u32 %v232_v46, %v231_v53  ;;  %v236_v61 = vshll.u32 %v235_v54, 23 }
  0xe6   :  { %v377_v56 = vsub.s32 %v373_v2, %v376_v62  ;;  %v400_v49 = vsel %vm277_vm10, %v399_v36, %v375_v55  ;;  %v265_v62 = vand.u32 3, %v264_v51  ;;  %v112_v55 = vld [vmem:[%s712_s3] sm:$0x3] }
  0xe7   :  { %v237_v63 = vor.u32 4788187, %v236_v61  ;;  %v240_v1 = vcvt.s32.f32 %v233_v59  ;;  %v402_v57 = vsel %vm685_vm11, 0, %v400_v49  ;;  %v115_v12 = vperm.slane %v112_v55, 1 }
  0xe8   :  { %vm378_vm6 = vcmp.lt.s32.totalorder %v377_v56, 0  ;;  %v379_v4 = vsub.s32 0, %v377_v56  ;;  %vm267_vm12 = vcmp.eq.s32.totalorder %v265_v62, 0  ;;  %vm270_vm13 = vcmp.eq.s32.totalorder %v265_v62, 2 }
  0xe9   :  { %v238_v10 = vand.u32 2147483647, %v237_v63  ;;  %v419_v63 = vadd.s32 3, %v402_v57  ;;  %vm266_vm14 = vcmp.lt.s32.totalorder %v265_v62, 2  ;;  %vm119_vm1 = vcmp.ne.f32.partialorder %v115_v12, 0.0 }
  0xea   :  { %v380_v7 = vsel %vm378_vm6, %v379_v4, %v377_v56  ;;  %vm435_vm6 = vcmask 1041408  }
  0xeb   :  { %v241_v6 = vmul.f32 %v240_v1, %v238_v10  ;;  %v381_v28 = vclz %v380_v7 }
  0xed   :  { %v242_v8 = vxor.u32 2147483648, %v241_v6  ;;  %v448_v16 = vadd.s32 4294967294, %v381_v28 }
  0xef   :  { %v243_v13 = vsel %vm122_vm7, %v242_v8, %v241_v6  ;;  %vm449_vm9 = vcmp.lt.s32.totalorder %v448_v16, 0  ;;  %v420_v8 = vand.u32 3, %v419_v63 }
  0xf0   :  { %v246_v0 = vsel %vm672_vm8, %v530_v38, %v243_v13  ;;  %v384_v14 = vsel %vm449_vm9, 0, %v448_v16 }
  0xf1   :  { %v248_v17 = vmul.f32 %v246_v0, %v246_v0  ;;  %v385_v20 = vsub.s32 32, %v384_v14  ;;  %v389_v21 = vsub.s32 4294967266, %v384_v14  ;;  %v386_v23 = vshll.u32 %v377_v56, %v384_v14 }
  0xf2   :  { %vm422_vm15 = vcmp.eq.s32.totalorder %v420_v8, 0  ;;  %vm425_vm0 = vcmp.eq.s32.totalorder %v420_v8, 2  ;;  %vm421_vm2 = vcmp.lt.s32.totalorder %v420_v8, 2 }
  0xf3   :  { %v256_v15 = vmul.f32 -0.00019511016, %v248_v17  ;;  %v387_v22 = vshrl.u32 %v369_v18, %v385_v20  ;;  %v390_v24 = vadd.s32 127, %v389_v21  ;;  %v249_v25 = vmul.f32 -0.001358992, %v248_v17 }
  0xf5   :  { %v257_v40 = vadd.f32 0.008332121, %v256_v15  ;;  %v388_v26 = vor.u32 %v387_v22, %v386_v23  ;;  %v391_v27 = vshll.u32 %v390_v24, 23  ;;  %v250_v30 = vadd.f32 0.041655596, %v249_v25 }
  0xf7   :  { %v258_v29 = vmul.f32 %v257_v40, %v248_v17  ;;  %v392_v3 = vor.u32 4788187, %v391_v27  ;;  %v395_v9 = vcvt.s32.f32 %v388_v26  ;;  %v251_v19 = vmul.f32 %v250_v30, %v248_v17 }
  0xf9   :  { %v393_v31 = vand.u32 2147483647, %v392_v3  ;;  %v259_v58 = vadd.f32 -0.16666654, %v258_v29  ;;  %v252_v41 = vadd.f32 -0.4999988, %v251_v19 }
  0xfb   :  { %v396_v5 = vmul.f32 %v395_v9, %v393_v31  ;;  %v260_v33 = vmul.f32 %v259_v58, %v248_v17  ;;  %v253_v2 = vmul.f32 %v252_v41, %v248_v17 }
  0xfd   :  { %v397_v32 = vxor.u32 2147483648, %v396_v5  ;;  %v261_v50 = vadd.f32 1.0, %v260_v33  ;;  %v254_v54 = vadd.f32 1.0, %v253_v2 }
  0xff   :  { %v398_v34 = vsel %vm277_vm10, %v397_v32, %v396_v5  ;;  %v262_v52 = vmul.f32 %v261_v50, %v246_v0  ;;  %v271_v4 = vxor.u32 2147483648, %v254_v54  ;;  %v114_v0 = vperm.slane %v112_v55, 0 }
 0x100   :  { %v401_v37 = vsel %vm685_vm11, %v532_v39, %v398_v34 }
 0x101   :  { %v403_v47 = vmul.f32 %v401_v37, %v401_v37  ;;  %v268_v56 = vxor.u32 2147483648, %v262_v52  ;;  %v272_v17 = vsel %vm270_vm13, %v271_v4, %v262_v52  ;;  %vm118_vm5 = vcmp.ne.f32.partialorder %v114_v0, 0.0 }
 0x103   :  { %v404_v44 = vmul.f32 -0.001358992, %v403_v47  ;;  %v411_v48 = vmul.f32 -0.00019511016, %v403_v47  ;;  %v269_v28 = vsel %vm267_vm12, %v254_v54, %v268_v56 }
 0x104   :  { %v273_v15 = vsel %vm266_vm14, %v269_v28, %v272_v17 }
 0x105   :  { %v405_v43 = vadd.f32 0.041655596, %v404_v44  ;;  %v412_v45 = vadd.f32 0.008332121, %v411_v48  ;;  %v274_v22 = vsel %vm263_vm3, nan, %v273_v15 }
 0x106   :  { %v430_v25 = vsel %vm118_vm5, %v274_v22, %v530_v38 }
 0x107   :  { %v406_v53 = vmul.f32 %v405_v43, %v403_v47  ;;  %v413_v46 = vmul.f32 %v412_v45, %v403_v47 }
 0x109   :  { %v407_v59 = vadd.f32 -0.4999988, %v406_v53  ;;  %v414_v61 = vadd.f32 -0.16666654, %v413_v46 }
 0x10b   :  { %v408_v10 = vmul.f32 %v407_v59, %v403_v47  ;;  %v415_v1 = vmul.f32 %v414_v61, %v403_v47 }
 0x10d   :  { %v409_v6 = vadd.f32 1.0, %v408_v10  ;;  %v416_v7 = vadd.f32 1.0, %v415_v1 }
 0x10f   :  { %v417_v13 = vmul.f32 %v416_v7, %v401_v37  ;;  %v426_v16 = vxor.u32 2147483648, %v409_v6 }
 0x111   :  { %v423_v14 = vxor.u32 2147483648, %v417_v13  ;;  %v427_v20 = vsel %vm425_vm0, %v426_v16, %v417_v13 }
 0x113   :  { %v424_v18 = vsel %vm422_vm15, %v409_v6, %v423_v14 }
 0x114   :  { %v428_v21 = vsel %vm421_vm2, %v424_v18, %v427_v20 }
 0x115   :  { %v429_v40 = vsel %vm418_vm4, nan, %v428_v21 }
 0x116   :  { %v431_v23 = vsel %vm119_vm1, %v429_v40, %v532_v39 }
 0x117   :  { %v434_v24 = vrot.slane %v431_v23, 6 }
 0x119   :  { %v436_v26 = vsel %vm435_vm6, %v430_v25, %v434_v24 }
 0x11a   :  { %438 = vst [vmem:[%s713_s4] sm:$0xf] %v436_v26 }
 0x11b   :  { %443 = vsyncpa [#allocation3], 1 }

</bundles_post_ra>
